<compile_context>
chip_gen: v6e
topology: v6e:2x2x1
jax: 0.10.0
libtpu: 0.0.40
codegen_flags: <defaults>
</compile_context>

<pallas_src>
import jax
import jax.numpy as jnp
from jax import lax
from jax.experimental import pallas as pl

# ---------------- config ----------------
B, T = 2, 8
H = 32             # hidden_size
I = 64             # intermediate_size
E = 2              # num_experts
N = B * T
RMS_EPS = 1e-6     # config.rms_norm_eps
BIT_EPS = 1e-8     # BitLinear internal RMSNorm eps

GATE_COLS = 2 * I * E      # 256 : concatenated expert gate_proj outputs
CAT_COLS = GATE_COLS + E   # 258 : + router logits


# ---------------- in-kernel helpers ----------------
def _rmsnorm(x, w, eps):
    var = jnp.mean(x * x, axis=-1, keepdims=True)
    return x * lax.rsqrt(var + eps) * w


def _act_quant(xn):
    # BitLinear per-row 8-bit activation fake-quant.
    # Returns integer-valued q in [-128, 127] and the dequant scale amax/127.
    amax = jnp.maximum(jnp.max(jnp.abs(xn), axis=-1, keepdims=True), 1e-5)
    scale = 127.0 / amax
    q = jnp.clip(jnp.round(xn * scale), -128.0, 127.0)
    return q, amax / 127.0


# ---------------- the fused layer kernel ----------------
def layer_kernel(x_ref, attn_nw_ref, gate_bl_nw_ref, gate_w_ref,
                 mlp_nw_ref, mlp_bl_nw_ref, wcat_ref, colscale_ref,
                 down_bl_nw_ref, wdown_ref,
                 out_ref, logits_ref):
    x = x_ref[...]                                          # (N, H) f32

    # ---- attn_norm ----
    h = _rmsnorm(x, attn_nw_ref[...], RMS_EPS)

    # ---- attention_gate: BitLinear(H, 1) + sigmoid (done as mul+reduce) ----
    hq, h_s = _act_quant(_rmsnorm(h, gate_bl_nw_ref[...], BIT_EPS))
    gate_logit = jnp.sum(hq * gate_w_ref[...], axis=-1, keepdims=True) * h_s
    gate_w = jax.nn.sigmoid(gate_logit)                     # (N, 1)

    # ---- mlp_norm (prenorm=True): residual = h + x ; normed = RMSNorm ----
    residual = h + x
    normed = _rmsnorm(residual, mlp_nw_ref[...], RMS_EPS)

    # ---- shared BitLinear front-end for expert0.gate_proj | expert1.gate_proj
    #      | router : one RMSNorm + quant, one MXU dot (bf16 integer inputs).
    nq, n_s = _act_quant(_rmsnorm(normed, mlp_bl_nw_ref[...], BIT_EPS))
    y = jnp.dot(nq.astype(jnp.bfloat16), wcat_ref[...],
                preferred_element_type=jnp.float32)
    y = y * n_s * colscale_ref[...]                         # (N, 258) f32

    logits = y[:, GATE_COLS:CAT_COLS]                       # (N, E) router logits
    # softmax over 2 experts == sigmoid of the logit difference
    rw1 = jax.nn.sigmoid(logits[:, 1:2] - logits[:, 0:1])
    rw0 = 1.0 - rw1

    # ---- experts: swiglu(gate, a) ----
    g0, a0 = y[:, 0:I], y[:, I:2 * I]
    g1, a1 = y[:, 2 * I:3 * I], y[:, 3 * I:4 * I]
    z0 = g0 * a0 * jax.nn.sigmoid(a0)
    z1 = g1 * a1 * jax.nn.sigmoid(a1)

    # ---- down_proj (BitLinear I->H) for both experts + routing-weighted sum,
    #      fused into one (N, 2I) x (2I, H) dot: routing weight and activation
    #      dequant scale are folded into the fake-quantized activation.
    zq0, z0_s = _act_quant(_rmsnorm(z0, down_bl_nw_ref[0:1, :], BIT_EPS))
    zq1, z1_s = _act_quant(_rmsnorm(z1, down_bl_nw_ref[1:2, :], BIT_EPS))
    a_cat = jnp.concatenate([zq0 * (z0_s * rw0), zq1 * (z1_s * rw1)], axis=-1)
    moe = jnp.dot(a_cat, wdown_ref[...], preferred_element_type=jnp.float32)

    # ---- scalar gate + final residual ----
    out_ref[...] = residual + moe * gate_w
    logits_ref[...] = logits


# ---------------- glue: one-time weight preparation (outside jit) -----------
def weight_quant_int(w):
    # ternary fake-quant (per-tensor mean-abs scale), kept as integer values
    scale = 1.0 / jnp.maximum(jnp.mean(jnp.abs(w)), 1e-5)
    return jnp.clip(jnp.round(w * scale), -1.0, 1.0), 1.0 / scale


def prepare_params(raw):
    # attention_gate weight (1, H): dequantized f32 row
    q, s = weight_quant_int(raw["attn_gate"]["w"])
    gate_w_row = q * s                                         # (1, H)

    # concat [expert0.gate_proj (2I,H), expert1.gate_proj (2I,H), router (E,H)]
    cols, scales = [], []
    for w in (raw["experts"][0]["gate_proj"]["w"],
              raw["experts"][1]["gate_proj"]["w"],
              raw["router"]["w"]):
        q, s = weight_quant_int(w)                             # (out, H) integer
        cols.append(q.T)                                       # (H, out)
        scales.append(jnp.full((1, q.shape[0]), s, jnp.float32))
    w_cat = jnp.concatenate(cols, axis=1).astype(jnp.bfloat16)  # (H, 258)
    col_scale = jnp.concatenate(scales, axis=1)                 # (1, 258)

    # down_proj weights: dequantized, transposed, stacked along K -> (2I, H)
    dws = []
    for e in range(E):
        q, s = weight_quant_int(raw["experts"][e]["down_proj"]["w"])  # (H, I)
        dws.append((q * s).T)                                          # (I, H)
    w_down = jnp.concatenate(dws, axis=0)                              # (2I, H)

    down_bl_nw = jnp.stack(
        [raw["experts"][e]["down_proj"]["nw"] for e in range(E)], axis=0)  # (E, I)

    return dict(
        attn_norm_w=raw["attn_norm_w"].reshape(1, H),
        gate_bl_nw=raw["attn_gate"]["nw"].reshape(1, H),
        gate_w_row=gate_w_row,
        mlp_norm_w=raw["mlp_norm_w"].reshape(1, H),
        mlp_bl_nw=raw["mlp_bl_nw"].reshape(1, H),
        w_cat=w_cat, col_scale=col_scale,
        down_bl_nw=down_bl_nw, w_down=w_down,
    )


# ---------------- forward ----------------
def decoder_layer_forward(x, p):
    b, t, h = x.shape
    n = b * t
    out2d, logits = pl.pallas_call(
        layer_kernel,
        out_shape=(jax.ShapeDtypeStruct((n, h), jnp.float32),
                   jax.ShapeDtypeStruct((n, E), jnp.float32)),
    )(x.reshape(n, h), p["attn_norm_w"], p["gate_bl_nw"], p["gate_w_row"],
      p["mlp_norm_w"], p["mlp_bl_nw"], p["w_cat"], p["col_scale"],
      p["down_bl_nw"], p["w_down"])
    return out2d.reshape(b, t, h), logits


# ---------------- deterministic param init ----------------
def init_raw_params(key):
    def bit(k, out_f, in_f):
        return {"w": jax.random.normal(k, (out_f, in_f), jnp.float32) * 0.05,
                "nw": jnp.ones((in_f,), jnp.float32)}

    keys = jax.random.split(key, 2 + 2 * E)
    return {
        "attn_norm_w": jnp.ones((H,), jnp.float32),
        "mlp_norm_w": jnp.ones((H,), jnp.float32),
        "mlp_bl_nw": jnp.ones((H,), jnp.float32),   # shared BitLinear norm weight
        "attn_gate": bit(keys[0], 1, H),
        "router": bit(keys[1], E, H),
        "experts": [
            {"gate_proj": bit(keys[2 + 2 * e], 2 * I, H),
             "down_proj": bit(keys[3 + 2 * e], H, I)}
            for e in range(E)
        ],
    }


if __name__ == "__main__":
    key = jax.random.PRNGKey(0)
    kx, kp = jax.random.split(key)
    x = jax.random.normal(kx, (B, T, H), jnp.float32)

    raw = init_raw_params(kp)
    params = prepare_params(raw)          # weight quant/transpose/concat: once

    fwd = jax.jit(decoder_layer_forward)
    out, router_logits = fwd(x, params)
    jax.block_until_ready((out, router_logits))

    assert out.shape == (B, T, H)
    assert router_logits.shape == (N, E)
    assert bool(jnp.all(jnp.isfinite(out)))
    assert bool(jnp.all(jnp.isfinite(router_logits)))
    print("KERNEL_OK")
</pallas_src>

<mosaic_0001>
module attributes {stable_mosaic.version = 11 : i64} {
  func.func @layer_kernel(%arg0: memref<16x32xf32, #tpu.memory_space<vmem>>, %arg1: memref<1x32xf32, #tpu.memory_space<vmem>>, %arg2: memref<1x32xf32, #tpu.memory_space<vmem>>, %arg3: memref<1x32xf32, #tpu.memory_space<vmem>>, %arg4: memref<1x32xf32, #tpu.memory_space<vmem>>, %arg5: memref<1x32xf32, #tpu.memory_space<vmem>>, %arg6: memref<32x258xbf16, #tpu.memory_space<vmem>>, %arg7: memref<1x258xf32, #tpu.memory_space<vmem>>, %arg8: memref<2x64xf32, #tpu.memory_space<vmem>>, %arg9: memref<128x32xf32, #tpu.memory_space<vmem>>, %arg10: memref<16x32xf32, #tpu.memory_space<vmem>>, %arg11: memref<16x2xf32, #tpu.memory_space<vmem>>) attributes {dimension_semantics = [], scalar_prefetch = 0 : i64, scratch_operands = 0 : i64, tpu.core_type = #tpu.core_type<tc>} {
    %c0 = arith.constant 0 : index
    %c0_0 = arith.constant 0 : index
    %0 = vector.load %arg0[%c0, %c0_0] : memref<16x32xf32, #tpu.memory_space<vmem>>, vector<16x32xf32>
    %c0_1 = arith.constant 0 : index
    %c0_2 = arith.constant 0 : index
    %1 = vector.load %arg1[%c0_1, %c0_2] : memref<1x32xf32, #tpu.memory_space<vmem>>, vector<1x32xf32>
    %2 = arith.mulf %0, %0 : vector<16x32xf32>
    %cst = arith.constant dense<0.000000e+00> : vector<16xf32>
    %3 = vector.multi_reduction <add>, %2, %cst [1] : vector<16x32xf32> to vector<16xf32>
    %4 = vector.shape_cast %3 : vector<16xf32> to vector<16x1xf32>
    %cst_3 = arith.constant 3.200000e+01 : f32
    %5 = vector.broadcast %cst_3 : f32 to vector<16x1xf32>
    %6 = arith.divf %4, %5 : vector<16x1xf32>
    %cst_4 = arith.constant 9.99999997E-7 : f32
    %7 = vector.broadcast %cst_4 : f32 to vector<16x1xf32>
    %8 = arith.addf %6, %7 : vector<16x1xf32>
    %9 = math.rsqrt %8 : vector<16x1xf32>
    %10 = vector.broadcast %9 : vector<16x1xf32> to vector<16x32xf32>
    %11 = arith.mulf %0, %10 : vector<16x32xf32>
    %12 = vector.broadcast %1 : vector<1x32xf32> to vector<16x32xf32>
    %13 = arith.mulf %11, %12 : vector<16x32xf32>
    %c0_5 = arith.constant 0 : index
    %c0_6 = arith.constant 0 : index
    %14 = vector.load %arg2[%c0_5, %c0_6] : memref<1x32xf32, #tpu.memory_space<vmem>>, vector<1x32xf32>
    %15 = arith.mulf %13, %13 : vector<16x32xf32>
    %cst_7 = arith.constant dense<0.000000e+00> : vector<16xf32>
    %16 = vector.multi_reduction <add>, %15, %cst_7 [1] : vector<16x32xf32> to vector<16xf32>
    %17 = vector.shape_cast %16 : vector<16xf32> to vector<16x1xf32>
    %cst_8 = arith.constant 3.200000e+01 : f32
    %18 = vector.broadcast %cst_8 : f32 to vector<16x1xf32>
    %19 = arith.divf %17, %18 : vector<16x1xf32>
    %cst_9 = arith.constant 9.99999993E-9 : f32
    %20 = vector.broadcast %cst_9 : f32 to vector<16x1xf32>
    %21 = arith.addf %19, %20 : vector<16x1xf32>
    %22 = math.rsqrt %21 : vector<16x1xf32>
    %23 = vector.broadcast %22 : vector<16x1xf32> to vector<16x32xf32>
    %24 = arith.mulf %13, %23 : vector<16x32xf32>
    %25 = vector.broadcast %14 : vector<1x32xf32> to vector<16x32xf32>
    %26 = arith.mulf %24, %25 : vector<16x32xf32>
    %27 = math.absf %26 : vector<16x32xf32>
    %cst_10 = arith.constant dense<0xFF800000> : vector<16xf32>
    %28 = vector.multi_reduction <maximumf>, %27, %cst_10 [1] : vector<16x32xf32> to vector<16xf32>
    %29 = vector.shape_cast %28 : vector<16xf32> to vector<16x1xf32>
    %cst_11 = arith.constant 9.99999974E-6 : f32
    %30 = vector.broadcast %cst_11 : f32 to vector<16x1xf32>
    %31 = arith.maximumf %29, %30 : vector<16x1xf32>
    %cst_12 = arith.constant 1.270000e+02 : f32
    %32 = vector.broadcast %cst_12 : f32 to vector<16x1xf32>
    %33 = arith.divf %32, %31 : vector<16x1xf32>
    %34 = vector.broadcast %33 : vector<16x1xf32> to vector<16x32xf32>
    %35 = arith.mulf %26, %34 : vector<16x32xf32>
    %36 = math.roundeven %35 : vector<16x32xf32>
    %cst_13 = arith.constant -1.280000e+02 : f32
    %cst_14 = arith.constant 1.270000e+02 : f32
    %37 = vector.broadcast %cst_13 : f32 to vector<16x32xf32>
    %38 = arith.maximumf %37, %36 : vector<16x32xf32>
    %39 = vector.broadcast %cst_14 : f32 to vector<16x32xf32>
    %40 = arith.minimumf %39, %38 : vector<16x32xf32>
    %cst_15 = arith.constant 1.270000e+02 : f32
    %41 = vector.broadcast %cst_15 : f32 to vector<16x1xf32>
    %42 = arith.divf %31, %41 : vector<16x1xf32>
    %c0_16 = arith.constant 0 : index
    %c0_17 = arith.constant 0 : index
    %43 = vector.load %arg3[%c0_16, %c0_17] : memref<1x32xf32, #tpu.memory_space<vmem>>, vector<1x32xf32>
    %44 = vector.broadcast %43 : vector<1x32xf32> to vector<16x32xf32>
    %45 = arith.mulf %40, %44 : vector<16x32xf32>
    %cst_18 = arith.constant dense<0.000000e+00> : vector<16xf32>
    %46 = vector.multi_reduction <add>, %45, %cst_18 [1] : vector<16x32xf32> to vector<16xf32>
    %47 = vector.shape_cast %46 : vector<16xf32> to vector<16x1xf32>
    %48 = arith.mulf %47, %42 : vector<16x1xf32>
    %49 = arith.negf %48 : vector<16x1xf32>
    %50 = math.exp %49 : vector<16x1xf32>
    %cst_19 = arith.constant 1.000000e+00 : f32
    %51 = vector.broadcast %cst_19 : f32 to vector<16x1xf32>
    %52 = arith.addf %51, %50 : vector<16x1xf32>
    %53 = arith.divf %51, %52 : vector<16x1xf32>
    %54 = arith.addf %13, %0 : vector<16x32xf32>
    %c0_20 = arith.constant 0 : index
    %c0_21 = arith.constant 0 : index
    %55 = vector.load %arg4[%c0_20, %c0_21] : memref<1x32xf32, #tpu.memory_space<vmem>>, vector<1x32xf32>
    %56 = arith.mulf %54, %54 : vector<16x32xf32>
    %cst_22 = arith.constant dense<0.000000e+00> : vector<16xf32>
    %57 = vector.multi_reduction <add>, %56, %cst_22 [1] : vector<16x32xf32> to vector<16xf32>
    %58 = vector.shape_cast %57 : vector<16xf32> to vector<16x1xf32>
    %cst_23 = arith.constant 3.200000e+01 : f32
    %59 = vector.broadcast %cst_23 : f32 to vector<16x1xf32>
    %60 = arith.divf %58, %59 : vector<16x1xf32>
    %cst_24 = arith.constant 9.99999997E-7 : f32
    %61 = vector.broadcast %cst_24 : f32 to vector<16x1xf32>
    %62 = arith.addf %60, %61 : vector<16x1xf32>
    %63 = math.rsqrt %62 : vector<16x1xf32>
    %64 = vector.broadcast %63 : vector<16x1xf32> to vector<16x32xf32>
    %65 = arith.mulf %54, %64 : vector<16x32xf32>
    %66 = vector.broadcast %55 : vector<1x32xf32> to vector<16x32xf32>
    %67 = arith.mulf %65, %66 : vector<16x32xf32>
    %c0_25 = arith.constant 0 : index
    %c0_26 = arith.constant 0 : index
    %68 = vector.load %arg5[%c0_25, %c0_26] : memref<1x32xf32, #tpu.memory_space<vmem>>, vector<1x32xf32>
    %69 = arith.mulf %67, %67 : vector<16x32xf32>
    %cst_27 = arith.constant dense<0.000000e+00> : vector<16xf32>
    %70 = vector.multi_reduction <add>, %69, %cst_27 [1] : vector<16x32xf32> to vector<16xf32>
    %71 = vector.shape_cast %70 : vector<16xf32> to vector<16x1xf32>
    %cst_28 = arith.constant 3.200000e+01 : f32
    %72 = vector.broadcast %cst_28 : f32 to vector<16x1xf32>
    %73 = arith.divf %71, %72 : vector<16x1xf32>
    %cst_29 = arith.constant 9.99999993E-9 : f32
    %74 = vector.broadcast %cst_29 : f32 to vector<16x1xf32>
    %75 = arith.addf %73, %74 : vector<16x1xf32>
    %76 = math.rsqrt %75 : vector<16x1xf32>
    %77 = vector.broadcast %76 : vector<16x1xf32> to vector<16x32xf32>
    %78 = arith.mulf %67, %77 : vector<16x32xf32>
    %79 = vector.broadcast %68 : vector<1x32xf32> to vector<16x32xf32>
    %80 = arith.mulf %78, %79 : vector<16x32xf32>
    %81 = math.absf %80 : vector<16x32xf32>
    %cst_30 = arith.constant dense<0xFF800000> : vector<16xf32>
    %82 = vector.multi_reduction <maximumf>, %81, %cst_30 [1] : vector<16x32xf32> to vector<16xf32>
    %83 = vector.shape_cast %82 : vector<16xf32> to vector<16x1xf32>
    %cst_31 = arith.constant 9.99999974E-6 : f32
    %84 = vector.broadcast %cst_31 : f32 to vector<16x1xf32>
    %85 = arith.maximumf %83, %84 : vector<16x1xf32>
    %cst_32 = arith.constant 1.270000e+02 : f32
    %86 = vector.broadcast %cst_32 : f32 to vector<16x1xf32>
    %87 = arith.divf %86, %85 : vector<16x1xf32>
    %88 = vector.broadcast %87 : vector<16x1xf32> to vector<16x32xf32>
    %89 = arith.mulf %80, %88 : vector<16x32xf32>
    %90 = math.roundeven %89 : vector<16x32xf32>
    %cst_33 = arith.constant -1.280000e+02 : f32
    %cst_34 = arith.constant 1.270000e+02 : f32
    %91 = vector.broadcast %cst_33 : f32 to vector<16x32xf32>
    %92 = arith.maximumf %91, %90 : vector<16x32xf32>
    %93 = vector.broadcast %cst_34 : f32 to vector<16x32xf32>
    %94 = arith.minimumf %93, %92 : vector<16x32xf32>
    %cst_35 = arith.constant 1.270000e+02 : f32
    %95 = vector.broadcast %cst_35 : f32 to vector<16x1xf32>
    %96 = arith.divf %85, %95 : vector<16x1xf32>
    %97 = arith.truncf %94 : vector<16x32xf32> to vector<16x32xbf16>
    %c0_36 = arith.constant 0 : index
    %c0_37 = arith.constant 0 : index
    %98 = vector.load %arg6[%c0_36, %c0_37] : memref<32x258xbf16, #tpu.memory_space<vmem>>, vector<32x258xbf16>
    %cst_38 = arith.constant dense<0.000000e+00> : vector<16x258xf32>
    %99 = tpu.matmul %97, %98, %cst_38 {dimension_numbers = #tpu.dot_dimension_numbers<[1], [0], [0], [1], [0, 0, 1, 1], [], []>} : vector<16x32xbf16>, vector<32x258xbf16>, vector<16x258xf32> -> vector<16x258xf32>
    %100 = vector.broadcast %96 : vector<16x1xf32> to vector<16x258xf32>
    %101 = arith.mulf %99, %100 : vector<16x258xf32>
    %c0_39 = arith.constant 0 : index
    %c0_40 = arith.constant 0 : index
    %102 = vector.load %arg7[%c0_39, %c0_40] : memref<1x258xf32, #tpu.memory_space<vmem>>, vector<1x258xf32>
    %103 = vector.broadcast %102 : vector<1x258xf32> to vector<16x258xf32>
    %104 = arith.mulf %101, %103 : vector<16x258xf32>
    %105 = vector.extract_strided_slice %104 {offsets = [0, 256], sizes = [16, 2], strides = [1, 1]} : vector<16x258xf32> to vector<16x2xf32>
    %106 = vector.extract_strided_slice %105 {offsets = [0, 1], sizes = [16, 1], strides = [1, 1]} : vector<16x2xf32> to vector<16x1xf32>
    %107 = vector.extract_strided_slice %105 {offsets = [0, 0], sizes = [16, 1], strides = [1, 1]} : vector<16x2xf32> to vector<16x1xf32>
    %108 = arith.subf %106, %107 : vector<16x1xf32>
    %109 = arith.negf %108 : vector<16x1xf32>
    %110 = math.exp %109 : vector<16x1xf32>
    %cst_41 = arith.constant 1.000000e+00 : f32
    %111 = vector.broadcast %cst_41 : f32 to vector<16x1xf32>
    %112 = arith.addf %111, %110 : vector<16x1xf32>
    %113 = arith.divf %111, %112 : vector<16x1xf32>
    %cst_42 = arith.constant 1.000000e+00 : f32
    %114 = vector.broadcast %cst_42 : f32 to vector<16x1xf32>
    %115 = arith.subf %114, %113 : vector<16x1xf32>
    %116 = vector.extract_strided_slice %104 {offsets = [0, 0], sizes = [16, 64], strides = [1, 1]} : vector<16x258xf32> to vector<16x64xf32>
    %117 = vector.extract_strided_slice %104 {offsets = [0, 64], sizes = [16, 64], strides = [1, 1]} : vector<16x258xf32> to vector<16x64xf32>
    %118 = vector.extract_strided_slice %104 {offsets = [0, 128], sizes = [16, 64], strides = [1, 1]} : vector<16x258xf32> to vector<16x64xf32>
    %119 = vector.extract_strided_slice %104 {offsets = [0, 192], sizes = [16, 64], strides = [1, 1]} : vector<16x258xf32> to vector<16x64xf32>
    %120 = arith.mulf %116, %117 : vector<16x64xf32>
    %121 = arith.negf %117 : vector<16x64xf32>
    %122 = math.exp %121 : vector<16x64xf32>
    %cst_43 = arith.constant 1.000000e+00 : f32
    %123 = vector.broadcast %cst_43 : f32 to vector<16x64xf32>
    %124 = arith.addf %123, %122 : vector<16x64xf32>
    %125 = arith.divf %123, %124 : vector<16x64xf32>
    %126 = arith.mulf %120, %125 : vector<16x64xf32>
    %127 = arith.mulf %118, %119 : vector<16x64xf32>
    %128 = arith.negf %119 : vector<16x64xf32>
    %129 = math.exp %128 : vector<16x64xf32>
    %cst_44 = arith.constant 1.000000e+00 : f32
    %130 = vector.broadcast %cst_44 : f32 to vector<16x64xf32>
    %131 = arith.addf %130, %129 : vector<16x64xf32>
    %132 = arith.divf %130, %131 : vector<16x64xf32>
    %133 = arith.mulf %127, %132 : vector<16x64xf32>
    %c0_45 = arith.constant 0 : index
    %c0_46 = arith.constant 0 : index
    %134 = vector.load %arg8[%c0_45, %c0_46] : memref<2x64xf32, #tpu.memory_space<vmem>>, vector<1x64xf32>
    %135 = arith.mulf %126, %126 : vector<16x64xf32>
    %cst_47 = arith.constant dense<0.000000e+00> : vector<16xf32>
    %136 = vector.multi_reduction <add>, %135, %cst_47 [1] : vector<16x64xf32> to vector<16xf32>
    %137 = vector.shape_cast %136 : vector<16xf32> to vector<16x1xf32>
    %cst_48 = arith.constant 6.400000e+01 : f32
    %138 = vector.broadcast %cst_48 : f32 to vector<16x1xf32>
    %139 = arith.divf %137, %138 : vector<16x1xf32>
    %cst_49 = arith.constant 9.99999993E-9 : f32
    %140 = vector.broadcast %cst_49 : f32 to vector<16x1xf32>
    %141 = arith.addf %139, %140 : vector<16x1xf32>
    %142 = math.rsqrt %141 : vector<16x1xf32>
    %143 = vector.broadcast %142 : vector<16x1xf32> to vector<16x64xf32>
    %144 = arith.mulf %126, %143 : vector<16x64xf32>
    %145 = vector.broadcast %134 : vector<1x64xf32> to vector<16x64xf32>
    %146 = arith.mulf %144, %145 : vector<16x64xf32>
    %147 = math.absf %146 : vector<16x64xf32>
    %cst_50 = arith.constant dense<0xFF800000> : vector<16xf32>
    %148 = vector.multi_reduction <maximumf>, %147, %cst_50 [1] : vector<16x64xf32> to vector<16xf32>
    %149 = vector.shape_cast %148 : vector<16xf32> to vector<16x1xf32>
    %cst_51 = arith.constant 9.99999974E-6 : f32
    %150 = vector.broadcast %cst_51 : f32 to vector<16x1xf32>
    %151 = arith.maximumf %149, %150 : vector<16x1xf32>
    %cst_52 = arith.constant 1.270000e+02 : f32
    %152 = vector.broadcast %cst_52 : f32 to vector<16x1xf32>
    %153 = arith.divf %152, %151 : vector<16x1xf32>
    %154 = vector.broadcast %153 : vector<16x1xf32> to vector<16x64xf32>
    %155 = arith.mulf %146, %154 : vector<16x64xf32>
    %156 = math.roundeven %155 : vector<16x64xf32>
    %cst_53 = arith.constant -1.280000e+02 : f32
    %cst_54 = arith.constant 1.270000e+02 : f32
    %157 = vector.broadcast %cst_53 : f32 to vector<16x64xf32>
    %158 = arith.maximumf %157, %156 : vector<16x64xf32>
    %159 = vector.broadcast %cst_54 : f32 to vector<16x64xf32>
    %160 = arith.minimumf %159, %158 : vector<16x64xf32>
    %cst_55 = arith.constant 1.270000e+02 : f32
    %161 = vector.broadcast %cst_55 : f32 to vector<16x1xf32>
    %162 = arith.divf %151, %161 : vector<16x1xf32>
    %c1 = arith.constant 1 : index
    %c0_56 = arith.constant 0 : index
    %163 = vector.load %arg8[%c1, %c0_56] : memref<2x64xf32, #tpu.memory_space<vmem>>, vector<1x64xf32>
    %164 = arith.mulf %133, %133 : vector<16x64xf32>
    %cst_57 = arith.constant dense<0.000000e+00> : vector<16xf32>
    %165 = vector.multi_reduction <add>, %164, %cst_57 [1] : vector<16x64xf32> to vector<16xf32>
    %166 = vector.shape_cast %165 : vector<16xf32> to vector<16x1xf32>
    %cst_58 = arith.constant 6.400000e+01 : f32
    %167 = vector.broadcast %cst_58 : f32 to vector<16x1xf32>
    %168 = arith.divf %166, %167 : vector<16x1xf32>
    %cst_59 = arith.constant 9.99999993E-9 : f32
    %169 = vector.broadcast %cst_59 : f32 to vector<16x1xf32>
    %170 = arith.addf %168, %169 : vector<16x1xf32>
    %171 = math.rsqrt %170 : vector<16x1xf32>
    %172 = vector.broadcast %171 : vector<16x1xf32> to vector<16x64xf32>
    %173 = arith.mulf %133, %172 : vector<16x64xf32>
    %174 = vector.broadcast %163 : vector<1x64xf32> to vector<16x64xf32>
    %175 = arith.mulf %173, %174 : vector<16x64xf32>
    %176 = math.absf %175 : vector<16x64xf32>
    %cst_60 = arith.constant dense<0xFF800000> : vector<16xf32>
    %177 = vector.multi_reduction <maximumf>, %176, %cst_60 [1] : vector<16x64xf32> to vector<16xf32>
    %178 = vector.shape_cast %177 : vector<16xf32> to vector<16x1xf32>
    %cst_61 = arith.constant 9.99999974E-6 : f32
    %179 = vector.broadcast %cst_61 : f32 to vector<16x1xf32>
    %180 = arith.maximumf %178, %179 : vector<16x1xf32>
    %cst_62 = arith.constant 1.270000e+02 : f32
    %181 = vector.broadcast %cst_62 : f32 to vector<16x1xf32>
    %182 = arith.divf %181, %180 : vector<16x1xf32>
    %183 = vector.broadcast %182 : vector<16x1xf32> to vector<16x64xf32>
    %184 = arith.mulf %175, %183 : vector<16x64xf32>
    %185 = math.roundeven %184 : vector<16x64xf32>
    %cst_63 = arith.constant -1.280000e+02 : f32
    %cst_64 = arith.constant 1.270000e+02 : f32
    %186 = vector.broadcast %cst_63 : f32 to vector<16x64xf32>
    %187 = arith.maximumf %186, %185 : vector<16x64xf32>
    %188 = vector.broadcast %cst_64 : f32 to vector<16x64xf32>
    %189 = arith.minimumf %188, %187 : vector<16x64xf32>
    %cst_65 = arith.constant 1.270000e+02 : f32
    %190 = vector.broadcast %cst_65 : f32 to vector<16x1xf32>
    %191 = arith.divf %180, %190 : vector<16x1xf32>
    %192 = arith.mulf %162, %115 : vector<16x1xf32>
    %193 = vector.broadcast %192 : vector<16x1xf32> to vector<16x64xf32>
    %194 = arith.mulf %160, %193 : vector<16x64xf32>
    %195 = arith.mulf %191, %113 : vector<16x1xf32>
    %196 = vector.broadcast %195 : vector<16x1xf32> to vector<16x64xf32>
    %197 = arith.mulf %189, %196 : vector<16x64xf32>
    %198 = tpu.concatenate %194, %197 in 1 : vector<16x64xf32>, vector<16x64xf32> -> vector<16x128xf32>
    %c0_66 = arith.constant 0 : index
    %c0_67 = arith.constant 0 : index
    %199 = vector.load %arg9[%c0_66, %c0_67] : memref<128x32xf32, #tpu.memory_space<vmem>>, vector<128x32xf32>
    %cst_68 = arith.constant dense<0.000000e+00> : vector<16x32xf32>
    %200 = tpu.matmul %198, %199, %cst_68 {dimension_numbers = #tpu.dot_dimension_numbers<[1], [0], [0], [1], [0, 0, 1, 1], [], []>} : vector<16x128xf32>, vector<128x32xf32>, vector<16x32xf32> -> vector<16x32xf32>
    %201 = vector.broadcast %53 : vector<16x1xf32> to vector<16x32xf32>
    %202 = arith.mulf %200, %201 : vector<16x32xf32>
    %203 = arith.addf %54, %202 : vector<16x32xf32>
    %c0_69 = arith.constant 0 : index
    %c0_70 = arith.constant 0 : index
    %204 = vector.load %arg10[%c0_69, %c0_70] : memref<16x32xf32, #tpu.memory_space<vmem>>, vector<16x32xf32>
    tpu.vector_store %arg10[%c0_69, %c0_70], %203 {strides = array<i32>} : memref<16x32xf32, #tpu.memory_space<vmem>>, vector<16x32xf32>,
    %c0_71 = arith.constant 0 : index
    %c0_72 = arith.constant 0 : index
    %205 = vector.load %arg11[%c0_71, %c0_72] : memref<16x2xf32, #tpu.memory_space<vmem>>, vector<16x2xf32>
    tpu.vector_store %arg11[%c0_71, %c0_72], %105 {strides = array<i32>} : memref<16x2xf32, #tpu.memory_space<vmem>>, vector<16x2xf32>,
    return
  }
}

</mosaic_0001>

<bundles_post_ra>
// kernel: decoder_layer_forward.1
= control target key start
LH: loop header
LB: loop body
LE: loop exit
PB: predicated region body
PF: predicated region fallthrough
CT: control target
= control target key end

     0   :  { %vm44_vm0 = vcmask 261120   ;;  %s1266_s0 = inlined_call_operand.vmem [shape: f32[16,32], index: 0, kind: input, shape index: {}]   ;;  %s1267_s1 = inlined_call_operand.vmem [shape: f32[1,32], index: 1, kind: input, shape index: {}]   ;;  %s1268_s2 = inlined_call_operand.vmem [shape: f32[1,32], index: 2, kind: input, shape index: {}]   ;;  %s1269_s3 = inlined_call_operand.vmem [shape: f32[1,32], index: 3, kind: input, shape index: {}]   ;;  %s1270_s4 = inlined_call_operand.vmem [shape: f32[1,32], index: 4, kind: input, shape index: {}]   ;;  %s1271_s5 = inlined_call_operand.vmem [shape: f32[1,32], index: 5, kind: input, shape index: {}]   ;;  %s1272_s6 = inlined_call_operand.vmem [shape: bf16[32,258], index: 6, kind: input, shape index: {}]   ;;  %s1273_s7 = inlined_call_operand.vmem [shape: f32[1,258], index: 7, kind: input, shape index: {}]   ;;  %s1274_s8 = inlined_call_operand.vmem [shape: f32[2,64], index: 8, kind: input, shape index: {}]   ;;  %s1275_s9 = inlined_call_operand.vmem [shape: f32[128,32], index: 9, kind: input, shape index: {}]   ;;  %s1276_s10 = inlined_call_operand.hbm [shape: f32[16,32], index: 10, kind: output, shape index: {0}]   ;;  %s1277_s11 = inlined_call_operand.vmem [shape: f32[16,2], index: 11, kind: output, shape index: {1}]  }
   0x1   :  { %v39_v0 = vld [vmem:[%s1266_s0] sm:$0xff]  ;;  %v40_v1 = vld [vmem:[%s1266_s0 + $0x8] sm:$0xff] }
   0x2   :  { %v42_v2 = vmul.f32 %v39_v0, %v39_v0  ;;  %v43_v3 = vmul.f32 %v40_v1, %v40_v1 }
   0x4   :  { %v45_v4 = vsel %vm44_vm0, %v42_v2, 0.0 }
   0x5   :  { %17 = vsyncpa [#allocation3], 0  ;;  %46 = vadd.xlane.f32.xlu0 %v45_v4  ;;  %v48_v5 = vsel %vm44_vm0, %v43_v3, 0.0  ;;  %v722_v13 = vld [vmem:[%s1267_s1] ss:$0 sm:$0xff]  ;;  %v991_v62 = vmov 0  }
   0x6   :  { %v727_v32 = vld [vmem:[%s1270_s4] ss:$0 sm:$0xff]  ;;  %v889_v59 = vld [vmem:[%s1272_s6 + $0x1c] ss:$12 sps:$4 sm:$0xff]   ;;  %v891_v60 = vld [vmem:[%s1272_s6 + $0x18] ss:$12 sps:$4 sm:$0xff]   ;;  %299 = vmatprep.mubr.bf16.mxu1 %v991_v62 }
   0x7   :  { %v728_v49 = vld [vmem:[%s1271_s5] ss:$0 sm:$0xff]  ;;  %v892_v61 = vld [vmem:[%s1272_s6 + $0x4] ss:$12 sps:$4 sm:$0xff]   ;;  %279 = vmatprep.subr.bf16.mxu1 %v889_v59  ;;  %vm993_vm3 = vmmov 0   ;;  %vm699_vm4 = vcmask 15360  }
   0x8   :  { %280 = vmatpush1.bf16.msra.mxu1 %v891_v60  ;;  %v894_v63 = vld [vmem:[%s1272_s6] ss:$12 sps:$4 sm:$0xff]   ;;  %vm471_vm5 = vcmask 523264  }
   0x9   :  { %49 = vadd.xlane.f32.xlu0 %v48_v5  ;;  %281 = vmatprep.subr.bf16.mxu1 %v892_v61 }
   0xc   :  { %282 = vmatpush1.bf16.msra.mxu1 %v894_v63 }
  0x8e   :  { %v47_v6 = vpop.xlane.xlu0 %46 }
  0x8f   :  { %v52_v7 = vmul.f32 0.03125, %v47_v6 }
  0x91   :  { %v54_v8 = vadd.f32 1e-06, %v52_v7 }
  0x92   :  { %v50_v9 = vpop.xlane.xlu0 %49 }
  0x93   :  { %897 = vrsqrt.f32 %v54_v8  ;;  %v53_v10 = vmul.f32 0.03125, %v50_v9 }
  0x95   :  { %v55_v11 = vadd.f32 1e-06, %v53_v10 }
  0x97   :  { %899 = vrsqrt.f32 %v55_v11 }
  0xa0   :  { %v898_v12 = vpop.eup %897 }
  0xa1   :  { %v58_v14 = vmul.f32 %v898_v12, %v39_v0 }
  0xa3   :  { %v1071_v15 = vmul.f32 %v722_v13, %v58_v14 }
  0xa4   :  { %v900_v16 = vpop.eup %899 }
  0xa5   :  { %v1074_v17 = vadd.f32 %v1071_v15, %v39_v0  ;;  %v59_v18 = vmul.f32 %v900_v16, %v40_v1  ;;  %v992_v0 = vmov 0.0  }
  0xa6   :  { %766 = vmatprep.subr.bf16.mxu1 %v992_v0 }
  0xa7   :  { %v150_v19 = vmul.f32 %v1074_v17, %v1074_v17  ;;  %v1078_v20 = vmul.f32 %v722_v13, %v59_v18 }
  0xa9   :  { %v152_v21 = vsel %vm44_vm0, %v150_v19, 0.0  ;;  %v1082_v22 = vadd.f32 %v1078_v20, %v40_v1 }
  0xaa   :  { %153 = vadd.xlane.f32.xlu1 %v152_v21 }
  0xab   :  { %v151_v23 = vmul.f32 %v1082_v22, %v1082_v22 }
  0xad   :  { %v155_v24 = vsel %vm44_vm0, %v151_v23, 0.0 }
  0xae   :  { %156 = vadd.xlane.f32.xlu1 %v155_v24 }
 0x133   :  { %v154_v25 = vpop.xlane.xlu1 %153 }
 0x134   :  { %v158_v26 = vmul.f32 0.03125, %v154_v25 }
 0x136   :  { %v160_v27 = vadd.f32 1e-06, %v158_v26 }
 0x137   :  { %v157_v28 = vpop.xlane.xlu1 %156 }
 0x138   :  { %901 = vrsqrt.f32 %v160_v27  ;;  %v159_v29 = vmul.f32 0.03125, %v157_v28 }
 0x13a   :  { %v161_v30 = vadd.f32 1e-06, %v159_v29 }
 0x13c   :  { %903 = vrsqrt.f32 %v161_v30 }
 0x145   :  { %v902_v31 = vpop.eup %901 }
 0x146   :  { %v164_v33 = vmul.f32 %v902_v31, %v1074_v17 }
 0x148   :  { %v172_v34 = vmul.f32 %v727_v32, %v164_v33  ;;  %v895_v33 = vld [vmem:[%s1272_s6 + $0x20] ss:$12 sps:$4 sm:$0xff]  }
 0x149   :  { %v904_v35 = vpop.eup %903 }
 0x14a   :  { %v175_v36 = vmul.f32 %v172_v34, %v172_v34  ;;  %v165_v37 = vmul.f32 %v904_v35, %v1082_v22  ;;  %v896_v35 = vld [vmem:[%s1272_s6 + $0x8] ss:$12 sps:$4 sm:$0xff]   ;;  %s994_s6 = smov 64  }
 0x14c   :  { %v177_v38 = vsel %vm44_vm0, %v175_v36, 0.0  ;;  %v173_v39 = vmul.f32 %v727_v32, %v165_v37  ;;  %v359_v36 = vlaneseq }
 0x14d   :  { %178 = vadd.xlane.f32.xlu0 %v177_v38 }
 0x14e   :  { %v176_v40 = vmul.f32 %v173_v39, %v173_v39  ;;  %v360_v37 = vshrl.u32 %v359_v36, 7 }
 0x150   :  { %v180_v41 = vsel %vm44_vm0, %v176_v40, 0.0  ;;  %v361_v38 = vsub.s32 0, %v360_v37  ;;  %v365_v40 = vsub.s32 1, %v360_v37 }
 0x151   :  { %181 = vadd.xlane.f32.xlu1 %v180_v41 }
 0x1d6   :  { %v179_v42 = vpop.xlane.xlu0 %178 }
 0x1d7   :  { %v183_v43 = vmul.f32 0.03125, %v179_v42 }
 0x1d9   :  { %v185_v44 = vadd.f32 1e-08, %v183_v43 }
 0x1da   :  { %v182_v45 = vpop.xlane.xlu1 %181 }
 0x1db   :  { %905 = vrsqrt.f32 %v185_v44  ;;  %v184_v46 = vmul.f32 0.03125, %v182_v45 }
 0x1dd   :  { %v186_v47 = vadd.f32 1e-08, %v184_v46 }
 0x1df   :  { %907 = vrsqrt.f32 %v186_v47 }
 0x1e8   :  { %v906_v48 = vpop.eup %905 }
 0x1e9   :  { %v189_v50 = vmul.f32 %v906_v48, %v172_v34 }
 0x1eb   :  { %v197_v51 = vmul.f32 %v728_v49, %v189_v50  ;;  %v369_v50 = vsub.s32 2, %v360_v37 }
 0x1ec   :  { %v908_v52 = vpop.eup %907 }
 0x1ed   :  { %v199_v53 = vand.u32 2147483647, %v197_v51  ;;  %v190_v54 = vmul.f32 %v908_v52, %v173_v39  ;;  %v357_v39 = vld [vmem:[%s1273_s7] sm:$0x7] }
 0x1ee   :  { %v362_v42 = vrot.slane %v357_v39, %v361_v38  ;;  %v366_v45 = vrot.slane %v357_v39, %v365_v40 }
 0x1ef   :  { %v201_v55 = vsel %vm44_vm0, %v199_v53, -inf  ;;  %v198_v56 = vmul.f32 %v728_v49, %v190_v54 }
 0x1f0   :  { %202 = vmax.xlane.f32.xlu0 %v201_v55 }
 0x1f1   :  { %v200_v57 = vand.u32 2147483647, %v198_v56 }
 0x1f3   :  { %v204_v58 = vsel %vm44_vm0, %v200_v57, -inf }
 0x1f4   :  { %205 = vmax.xlane.f32.xlu1 %v204_v58  ;;  %v370_v58 = vrot.slane %v357_v39, %v369_v50 }
 0x279   :  { %v203_v1 = vpop.xlane.xlu0 %202 }
 0x27a   :  { %v207_v2 = vmax.f32 %v203_v1, 1e-05 }
 0x27c   :  { %909 = vrcp.f32 %v207_v2  ;;  %v221_v41 = vmul.f32 0.007874016, %v207_v2 }
 0x27d   :  { %v206_v3 = vpop.xlane.xlu1 %205 }
 0x27e   :  { %v208_v4 = vmax.f32 %v206_v3, 1e-05 }
 0x280   :  { %911 = vrcp.f32 %v208_v4  ;;  %v222_v47 = vmul.f32 0.007874016, %v208_v4 }
 0x289   :  { %v910_v5 = vpop.eup %909 }
 0x28a   :  { %v210_v6 = vmul.f32 127.0, %v910_v5 }
 0x28c   :  { %v213_v7 = vmul.f32 %v210_v6, %v197_v51 }
 0x28d   :  { %v912_v8 = vpop.eup %911 }
 0x28e   :  { %v827_v9 = vcvt.f32.s32 %v213_v7  ;;  %v212_v10 = vmul.f32 127.0, %v912_v8  ;;  %v825_v13 = vand.u32 2147483647, %v213_v7  ;;  %v830_v14 = vand.u32 2147483648, %v213_v7 }
 0x290   :  { %v828_v11 = vcvt.s32.f32 %v827_v9  ;;  %v214_v12 = vmul.f32 %v212_v10, %v198_v56  ;;  %vm826_vm1 = vcmp.lt.f32.partialorder %v825_v13, 8388608.0 }
 0x292   :  { %v835_v16 = vcvt.f32.s32 %v214_v12  ;;  %v829_v18 = vand.u32 2147483647, %v828_v11  ;;  %v833_v23 = vand.u32 2147483647, %v214_v12  ;;  %v838_v24 = vand.u32 2147483648, %v214_v12 }
 0x294   :  { %v836_v19 = vcvt.s32.f32 %v835_v16  ;;  %v831_v21 = vor.u32 %v830_v14, %v829_v18  ;;  %vm834_vm2 = vcmp.lt.f32.partialorder %v833_v23, 8388608.0 }
 0x296   :  { %v832_v25 = vsel %vm826_vm1, %v831_v21, %v213_v7  ;;  %v837_v26 = vand.u32 2147483647, %v836_v19 }
 0x297   :  { %v217_v28 = vmax.f32 %v832_v25, -128.0 }
 0x298   :  { %v839_v27 = vor.u32 %v838_v24, %v837_v26 }
 0x299   :  { %v219_v31 = vmin.f32 %v217_v28, 127.0 }
 0x29a   :  { %v840_v29 = vsel %vm834_vm2, %v839_v27, %v214_v12 }
 0x29b   :  { %v218_v30 = vmax.f32 %v840_v29, -128.0 }
 0x29d   :  { %v220_v32 = vmin.f32 %v218_v30, 127.0 }
 0x29f   :  { %v223_v34 = vpack.c.bf16 %v220_v32, %v219_v31 }
 0x2a1   :  { %735 = vmatmul.mubr.msk.bf16.vlgmr.msra.gmra.mxu1 %vm44_vm0, %v223_v34 }
 0x2a2   :  { %767 = vmatpush3.bf16.msra.mxu1 %v895_v33  ;;  %770 = vmatprep.mubr.msk.bf16.mxu1 %vm993_vm3, %v992_v0 }
 0x2a3   :  { %768 = vmatprep.subr.bf16.mxu1 %v992_v0 }
 0x2a6   :  { %769 = vmatpush3.bf16.msra.mxu1 %v896_v35 }
 0x2a9   :  { %771 = vmatmul.mubr.msk.bf16.vlgmr.msra.gmra.mxu1 %vm44_vm0, %v223_v34 }
 0x361   :  { %v301_v43 = vpop.f32.mrf.mxu1 }
 0x362   :  { %v351_v44 = vmul.f32 %v301_v43, %v221_v41 }
 0x363   :  { %v303_v46 = vpop.f32.mrf.mxu1 }
 0x364   :  { %v374_v48 = vmul.f32 %v362_v42, %v351_v44  ;;  %v352_v49 = vmul.f32 %v303_v46, %v221_v41 }
 0x365   :  { %v305_v51 = vpop.f32.mrf.mxu1 }
 0x366   :  { %v739_v52 = vmul.f32 -1.442695, %v374_v48  ;;  %v375_v53 = vmul.f32 %v366_v45, %v352_v49  ;;  %v354_v54 = vmul.f32 %v305_v51, %v222_v47 }
 0x367   :  { %v307_v55 = vpop.f32.mrf.mxu1 }
 0x368   :  { %913 = vpow2.f32 %v739_v52  ;;  %v741_v56 = vmul.f32 -1.442695, %v375_v53  ;;  %v355_v57 = vmul.f32 %v307_v55, %v222_v47  ;;  %438 = vrot.lane.b32.xlu0 %v375_v53, %s994_s6  ;;  %v377_v60 = vmul.f32 %v362_v42, %v354_v54 }
 0x369   :  { %v344_v59 = vpop.f32.mrf.mxu1 }
 0x36a   :  { %915 = vpow2.f32 %v741_v56  ;;  %v378_v61 = vmul.f32 %v366_v45, %v355_v57  ;;  %v353_v62 = vmul.f32 %v344_v59, %v221_v41  ;;  %v740_v3 = vmul.f32 -1.442695, %v377_v60 }
 0x36b   :  { %v772_v63 = vpop.f32.mrf.mxu1 }
 0x36c   :  { %v742_v0 = vmul.f32 -1.442695, %v378_v61  ;;  %v1123_v1 = vmul.f32 %v370_v58, %v353_v62  ;;  %406 = vrot.lane.b32.xlu0 %v374_v48, %s994_s6  ;;  %440 = vrot.lane.b32.xlu1 %v378_v61, %s994_s6 }
 0x36d   :  { %v347_v2 = vpop.f32.mrf.mxu1 }
 0x36e   :  { %917 = vpow2.f32 %v742_v0  ;;  %700 = vst.msk [vmem:[%s1277_s11] sm:$0xff] %vm699_vm4, %v1123_v1  ;;  %v356_v4 = vmul.f32 %v347_v2, %v222_v47 }
 0x36f   :  { %v773_v5 = vpop.f32.mrf.mxu1  ;;  %919 = vpow2.f32 %v740_v3  ;;  %v743_v3 = vld [vmem:[%s1274_s8] ss:$0 sm:$0xff] }
 0x370   :  { %v1131_v6 = vmul.f32 %v370_v58, %v356_v4 }
 0x372   :  { %701 = vst.msk [vmem:[%s1277_s11 + $0x8] sm:$0xff] %vm699_vm4, %v1131_v6  ;;  %s995_s11 = smov 1  }
 0x375   :  { %v914_v7 = vpop.eup %913 }
 0x376   :  { %v420_v8 = vadd.f32 1.0, %v914_v7 }
 0x377   :  { %v916_v9 = vpop.eup %915 }
 0x378   :  { %921 = vrcp.f32 %v420_v8  ;;  %v452_v10 = vadd.f32 1.0, %v916_v9 }
 0x37a   :  { %923 = vrcp.f32 %v452_v10 }
 0x37b   :  { %v918_v11 = vpop.eup %917 }
 0x37c   :  { %v453_v12 = vadd.f32 1.0, %v918_v11  ;;  %v920_v13 = vpop.eup %919 }
 0x37d   :  { %v421_v14 = vadd.f32 1.0, %v920_v13 }
 0x37e   :  { %925 = vrcp.f32 %v453_v12 }
 0x37f   :  { %927 = vrcp.f32 %v421_v14 }
 0x385   :  { %v922_v16 = vpop.eup %921 }
 0x386   :  { %428 = vrot.lane.b32.xlu0 %v922_v16, %s994_s6 }
 0x387   :  { %v924_v18 = vpop.eup %923 }
 0x388   :  { %460 = vrot.lane.b32.xlu1 %v924_v18, %s994_s6 }
 0x38b   :  { %v926_v19 = vpop.eup %925 }
 0x38c   :  { %462 = vrot.lane.b32.xlu1 %v926_v19, %s994_s6  ;;  %v928_v21 = vpop.eup %927 }
 0x390   :  { %408 = vrot.lane.b32.xlu1 %v377_v60, %s994_s6 }
 0x394   :  { %430 = vrot.lane.b32.xlu1 %v928_v21, %s994_s6 }
 0x3da   :  { %v439_v23 = vpop.permute.xlu0 %438 }
 0x3db   :  { %v444_v27 = vmul.f32 %v439_v23, %v375_v53  ;;  %v996_v23 = vmov 1  }
 0x3dc   :  { %882 = vset.pattern.permute.xlu0 %v996_v23  ;;  %883 = vset.pattern.permute.xlu1 %v996_v23 }
 0x3de   :  { %v407_v24 = vpop.permute.xlu0 %406  ;;  %v441_v25 = vpop.permute.xlu1 %440 }
 0x3df   :  { %v412_v28 = vmul.f32 %v407_v24, %v374_v48  ;;  %v445_v32 = vmul.f32 %v441_v25, %v378_v61 }
 0x3f8   :  { %v429_v26 = vpop.permute.xlu0 %428 }
 0x3f9   :  { %v434_v30 = vmul.f32 %v429_v26, %v412_v28 }
 0x3fa   :  { %v461_v29 = vpop.permute.xlu1 %460 }
 0x3fb   :  { %v466_v31 = vmul.f32 %v461_v29, %v444_v27  ;;  %v469_v37 = vmul.f32 %v434_v30, %v434_v30 }
 0x3fd   :  { %v518_v33 = vmul.f32 %v466_v31, %v466_v31  ;;  %v472_v40 = vsel %vm471_vm5, %v469_v37, 0.0 }
 0x3fe   :  { %v463_v34 = vpop.permute.xlu1 %462 }
 0x3ff   :  { %v467_v35 = vmul.f32 %v463_v34, %v445_v32  ;;  %v520_v36 = vsel %vm471_vm5, %v518_v33, 0.0 }
 0x400   :  { %521 = vadd.xlane.f32.xlu0 %v520_v36 }
 0x401   :  { %v519_v38 = vmul.f32 %v467_v35, %v467_v35 }
 0x402   :  { %v409_v39 = vpop.permute.xlu1 %408 }
 0x403   :  { %v523_v41 = vsel %vm471_vm5, %v519_v38, 0.0  ;;  %v413_v42 = vmul.f32 %v409_v39, %v377_v60  ;;  %v744_v60 = vld [vmem:[%s1274_s8 + $0x1] ss:$0 sm:$0xff] }
 0x404   :  { %473 = vadd.xlane.f32.xlu0 %v472_v40  ;;  %524 = vadd.xlane.f32.xlu1 %v523_v41 }
 0x406   :  { %v431_v43 = vpop.permute.xlu1 %430 }
 0x407   :  { %v435_v44 = vmul.f32 %v431_v43, %v413_v42  ;;  %v70_v42 = vmul.f32 %v1078_v20, %v1078_v20 }
 0x409   :  { %v470_v45 = vmul.f32 %v435_v44, %v435_v44  ;;  %v74_v43 = vsel %vm44_vm0, %v70_v42, 0.0 }
 0x40b   :  { %v475_v46 = vsel %vm471_vm5, %v470_v45, 0.0 }
 0x40c   :  { %476 = vadd.xlane.f32.xlu0 %v475_v46 }
 0x415   :  { %384 = vrot.lane.b32.xlu1 %v1131_v6, %s995_s11 }
 0x422   :  { %382 = vrot.lane.b32.xlu0 %v1123_v1, %s995_s11 }
 0x489   :  { %v522_v47 = vpop.xlane.xlu0 %521 }
 0x48a   :  { %v526_v48 = vmul.f32 0.015625, %v522_v47 }
 0x48c   :  { %v528_v49 = vadd.f32 1e-08, %v526_v48 }
 0x48d   :  { %v474_v50 = vpop.xlane.xlu0 %473  ;;  %v525_v51 = vpop.xlane.xlu1 %524 }
 0x48e   :  { %929 = vrsqrt.f32 %v528_v49  ;;  %v479_v52 = vmul.f32 0.015625, %v474_v50  ;;  %v527_v53 = vmul.f32 0.015625, %v525_v51 }
 0x490   :  { %v481_v54 = vadd.f32 1e-08, %v479_v52  ;;  %v529_v55 = vadd.f32 1e-08, %v527_v53 }
 0x491   :  { %v385_v26 = vpop.permute.xlu1 %384 }
 0x492   :  { %931 = vrsqrt.f32 %v481_v54  ;;  %v389_v28 = vsub.f32 %v1131_v6, %v385_v26 }
 0x493   :  { %933 = vrsqrt.f32 %v529_v55 }
 0x494   :  { %v738_v29 = vmul.f32 -1.442695, %v389_v28 }
 0x495   :  { %v477_v56 = vpop.xlane.xlu0 %476 }
 0x496   :  { %v480_v57 = vmul.f32 0.015625, %v477_v56  ;;  %v617_v56 = vld [vmem:[%s1275_s9 + $0x78] sm:$0xff] }
 0x497   :  { %774 = vmatprep.subr.mxu0 %v617_v56 }
 0x498   :  { %v482_v58 = vadd.f32 1e-08, %v480_v57  ;;  %v616_v57 = vld [vmem:[%s1275_s9 + $0x70] sm:$0xff]  ;;  %775 = vmatpush3.msra.mxu0 %v617_v56 }
 0x499   :  { %v383_v24 = vpop.permute.xlu0 %382  ;;  %776 = vmatprep.subr.mxu0 %v616_v57 }
 0x49a   :  { %935 = vrsqrt.f32 %v482_v58  ;;  %v388_v25 = vsub.f32 %v1123_v1, %v383_v24  ;;  %v615_v58 = vld [vmem:[%s1275_s9 + $0x68] sm:$0xff]  ;;  %777 = vmatpush3.msra.mxu0 %v616_v57 }
 0x49b   :  { %v930_v59 = vpop.eup %929  ;;  %778 = vmatprep.subr.mxu0 %v615_v58 }
 0x49c   :  { %v532_v61 = vmul.f32 %v930_v59, %v466_v31  ;;  %v737_v27 = vmul.f32 -1.442695, %v388_v25  ;;  %v614_v59 = vld [vmem:[%s1275_s9 + $0x60] sm:$0xff]  ;;  %779 = vmatpush3.msra.mxu0 %v615_v58 }
 0x49d   :  { %780 = vmatprep.subr.mxu0 %v614_v59 }
 0x49e   :  { %v1151_v62 = vmul.f32 %v744_v60, %v532_v61  ;;  %937 = vpow2.f32 %v737_v27  ;;  %781 = vmatpush3.msra.mxu0 %v614_v59  ;;  %v612_v61 = vld [vmem:[%s1275_s9 + $0x50] sm:$0xff] }
 0x49f   :  { %v932_v63 = vpop.eup %931  ;;  %939 = vpow2.f32 %v738_v29 }
 0x4a0   :  { %v934_v0 = vpop.eup %933  ;;  %v540_v2 = vand.u32 2147483647, %v1151_v62  ;;  %v485_v4 = vmul.f32 %v932_v63, %v434_v30  ;;  %v611_v63 = vld [vmem:[%s1275_s9 + $0x48] sm:$0xff] }
 0x4a1   :  { %v533_v5 = vmul.f32 %v934_v0, %v467_v35  ;;  %v610_v0 = vld [vmem:[%s1275_s9 + $0x40] sm:$0xff] }
 0x4a2   :  { %v542_v7 = vsel %vm471_vm5, %v540_v2, -inf  ;;  %v1160_v9 = vmul.f32 %v743_v3, %v485_v4  ;;  %v609_v2 = vld [vmem:[%s1275_s9 + $0x38] sm:$0xff]  ;;  %v608_v4 = vld [vmem:[%s1275_s9 + $0x30] sm:$0xff] }
 0x4a3   :  { %543 = vmax.xlane.f32.xlu1 %v542_v7  ;;  %v1158_v8 = vmul.f32 %v744_v60, %v533_v5  ;;  %v613_v60 = vld [vmem:[%s1275_s9 + $0x58] sm:$0xff]  ;;  %v607_v7 = vld [vmem:[%s1275_s9 + $0x28] sm:$0xff] }
 0x4a4   :  { %v493_v13 = vand.u32 2147483647, %v1160_v9  ;;  %782 = vmatprep.subr.mxu0 %v613_v60 }
 0x4a5   :  { %v541_v10 = vand.u32 2147483647, %v1158_v8  ;;  %783 = vmatpush3.msra.mxu0 %v613_v60 }
 0x4a6   :  { %v495_v18 = vsel %vm471_vm5, %v493_v13, -inf  ;;  %784 = vmatprep.subr.mxu0 %v612_v61  ;;  %v605_v13 = vld [vmem:[%s1275_s9 + $0x18] sm:$0xff] }
 0x4a7   :  { %v936_v11 = vpop.eup %935  ;;  %v545_v12 = vsel %vm471_vm5, %v541_v10, -inf  ;;  %785 = vmatpush3.msra.mxu0 %v612_v61 }
 0x4a8   :  { %546 = vmax.xlane.f32.xlu0 %v545_v12  ;;  %v486_v14 = vmul.f32 %v936_v11, %v435_v44  ;;  %v69_v44 = vmul.f32 %v1071_v15, %v1071_v15  ;;  %786 = vmatprep.subr.mxu0 %v611_v63  ;;  %v606_v12 = vld [vmem:[%s1275_s9 + $0x20] sm:$0xff] }
 0x4a9   :  { %787 = vmatpush3.msra.mxu0 %v611_v63 }
 0x4aa   :  { %v1165_v16 = vmul.f32 %v743_v3, %v486_v14  ;;  %v71_v45 = vsel %vm44_vm0, %v69_v44, 0.0  ;;  %788 = vmatprep.subr.mxu0 %v610_v0 }
 0x4ab   :  { %v938_v30 = vpop.eup %937  ;;  %789 = vmatpush3.msra.mxu0 %v610_v0 }
 0x4ac   :  { %496 = vmax.xlane.f32.xlu0 %v495_v18  ;;  %v494_v19 = vand.u32 2147483647, %v1165_v16  ;;  %v396_v31 = vadd.f32 1.0, %v938_v30  ;;  %v940_v32 = vpop.eup %939  ;;  %790 = vmatprep.subr.mxu0 %v609_v2 }
 0x4ad   :  { %v397_v33 = vadd.f32 1.0, %v940_v32  ;;  %791 = vmatpush3.msra.mxu0 %v609_v2 }
 0x4ae   :  { %v498_v21 = vsel %vm471_vm5, %v494_v19, -inf  ;;  %941 = vrcp.f32 %v396_v31  ;;  %792 = vmatprep.subr.mxu0 %v608_v4  ;;  %v604_v19 = vld [vmem:[%s1275_s9 + $0x10] sm:$0xff] }
 0x4af   :  { %499 = vmax.xlane.f32.xlu1 %v498_v21  ;;  %943 = vrcp.f32 %v397_v33  ;;  %793 = vmatpush3.msra.mxu0 %v608_v4 }
 0x4b0   :  { %794 = vmatprep.subr.mxu0 %v607_v7 }
 0x4b1   :  { %795 = vmatpush3.msra.mxu0 %v607_v7 }
 0x4b2   :  { %796 = vmatprep.subr.mxu0 %v606_v12 }
 0x4b3   :  { %797 = vmatpush3.msra.mxu0 %v606_v12 }
 0x4b4   :  { %798 = vmatprep.subr.mxu0 %v605_v13 }
 0x4b5   :  { %799 = vmatpush3.msra.mxu0 %v605_v13 }
 0x4b6   :  { %800 = vmatprep.subr.mxu0 %v604_v19 }
 0x4b7   :  { %801 = vmatpush3.msra.mxu0 %v604_v19 }
 0x4bb   :  { %v942_v37 = vpop.eup %941 }
 0x4bc   :  { %v944_v41 = vpop.eup %943  ;;  %v402_v51 = vsub.f32 1.0, %v942_v37 }
 0x4bd   :  { %v403_v54 = vsub.f32 1.0, %v944_v41 }
 0x52c   :  { %v544_v34 = vpop.xlane.xlu1 %543 }
 0x52d   :  { %v548_v35 = vmax.f32 %v544_v34, 1e-05  ;;  %v603_v34 = vld [vmem:[%s1275_s9 + $0x8] sm:$0xff] }
 0x52e   :  { %802 = vmatprep.subr.mxu0 %v603_v34 }
 0x52f   :  { %v562_v36 = vmul.f32 0.007874016, %v548_v35  ;;  %945 = vrcp.f32 %v548_v35  ;;  %v602_v35 = vld [vmem:[%s1275_s9] sm:$0xff]  ;;  %803 = vmatpush3.msra.mxu0 %v603_v34 }
 0x530   :  { %804 = vmatprep.subr.mxu0 %v602_v35 }
 0x531   :  { %v547_v38 = vpop.xlane.xlu0 %546  ;;  %v578_v39 = vmul.f32 %v942_v37, %v562_v36  ;;  %805 = vmatpush3.msra.mxu0 %v602_v35 }
 0x532   :  { %v549_v1 = vmax.f32 %v547_v38, 1e-05 }
 0x533   :  { %582 = vperm.xlu0 %882, %v578_v39  }
 0x534   :  { %v563_v40 = vmul.f32 0.007874016, %v549_v1  ;;  %947 = vrcp.f32 %v549_v1 }
 0x535   :  { %v1178_v46 = vpop.xlane.xlu0 %496 }
 0x536   :  { %v579_v6 = vmul.f32 %v944_v41, %v563_v40  ;;  %v501_v47 = vmax.f32 %v1178_v46, 1e-05 }
 0x538   :  { %587 = vperm.xlu1 %883, %v579_v6   ;;  %v1181_v48 = vpop.xlane.xlu1 %499  ;;  %v515_v49 = vmul.f32 0.007874016, %v501_v47 }
 0x539   :  { %v502_v50 = vmax.f32 %v1181_v48, 1e-05 }
 0x53a   :  { %v564_v53 = vmul.f32 %v515_v49, %v402_v51 }
 0x53b   :  { %v516_v52 = vmul.f32 0.007874016, %v502_v50 }
 0x53c   :  { %v946_v3 = vpop.eup %945 }
 0x53d   :  { %v565_v55 = vmul.f32 %v516_v52, %v403_v54  ;;  %v551_v10 = vmul.f32 127.0, %v946_v3  ;;  %v723_v54 = vld [vmem:[%s1268_s2] ss:$0 sm:$0xff] }
 0x53f   :  { %v554_v14 = vmul.f32 %v551_v10, %v1151_v62 }
 0x541   :  { %v948_v5 = vpop.eup %947  ;;  %v859_v21 = vcvt.f32.s32 %v554_v14  ;;  %v862_v28 = vand.u32 2147483648, %v554_v14  ;;  %v857_v62 = vand.u32 2147483647, %v554_v14 }
 0x542   :  { %v553_v11 = vmul.f32 127.0, %v948_v5 }
 0x543   :  { %v860_v24 = vcvt.s32.f32 %v859_v21  ;;  %vm858_vm6 = vcmp.lt.f32.partialorder %v857_v62, 8388608.0 }
 0x544   :  { %v555_v18 = vmul.f32 %v553_v11, %v1158_v8 }
 0x545   :  { %v861_v26 = vand.u32 2147483647, %v860_v24 }
 0x546   :  { %v867_v23 = vcvt.f32.s32 %v555_v18  ;;  %v870_v29 = vand.u32 2147483648, %v555_v18  ;;  %v865_v30 = vand.u32 2147483647, %v555_v18 }
 0x547   :  { %v863_v8 = vor.u32 %v862_v28, %v861_v26 }
 0x548   :  { %v868_v25 = vcvt.s32.f32 %v867_v23  ;;  %vm866_vm7 = vcmp.lt.f32.partialorder %v865_v30, 8388608.0 }
 0x549   :  { %v864_v32 = vsel %vm858_vm6, %v863_v8, %v554_v14 }
 0x54a   :  { %v869_v27 = vand.u32 2147483647, %v868_v25  ;;  %v558_v36 = vmax.f32 %v864_v32, -128.0 }
 0x54c   :  { %v871_v31 = vor.u32 %v870_v29, %v869_v27  ;;  %v560_v39 = vmin.f32 %v558_v36, 127.0 }
 0x54e   :  { %v872_v33 = vsel %vm866_vm7, %v871_v31, %v555_v18 }
 0x54f   :  { %v559_v37 = vmax.f32 %v872_v33, -128.0 }
 0x551   :  { %v561_v1 = vmin.f32 %v559_v37, 127.0 }
 0x552   :  { %75 = vadd.xlane.f32.xlu0 %v74_v43 }
 0x55c   :  { %72 = vadd.xlane.f32.xlu1 %v71_v45 }
 0x56d   :  { %568 = vperm.xlu1 %883, %v564_v53  }
 0x571   :  { %573 = vperm.xlu1 %883, %v565_v55  }
 0x5ae   :  { %v583_v38 = vpop.permute.xlu0 %582 }
 0x5af   :  { %v590_v41 = vmul.f32 %v583_v38, %v560_v39 }
 0x5b3   :  { %v588_v40 = vpop.permute.xlu1 %587 }
 0x5b4   :  { %v591_v6 = vmul.f32 %v588_v40, %v561_v1 }
 0x5b6   :  { %v884_v42 = vpack.i.bf16 %v591_v6, %v590_v41 }
 0x5b8   :  { %885 = vrot.lane.b32.xlu1 %v884_v42, %s994_s6 }
 0x5db   :  { %v76_v43 = vpop.xlane.xlu0 %75 }
 0x5dc   :  { %v78_v44 = vmul.f32 0.03125, %v76_v43 }
 0x5de   :  { %v80_v45 = vadd.f32 1e-08, %v78_v44 }
 0x5e0   :  { %949 = vrsqrt.f32 %v80_v45 }
 0x5e5   :  { %v73_v49 = vpop.xlane.xlu1 %72 }
 0x5e6   :  { %v77_v51 = vmul.f32 0.03125, %v73_v49 }
 0x5e8   :  { %v79_v52 = vadd.f32 1e-08, %v77_v51 }
 0x5e9   :  { %v569_v21 = vpop.permute.xlu1 %568 }
 0x5ea   :  { %951 = vrsqrt.f32 %v79_v52 }
 0x5eb   :  { %953 = vrcp.f32 %v501_v47 }
 0x5ec   :  { %955 = vrcp.f32 %v502_v50 }
 0x5ed   :  { %v950_v53 = vpop.eup %949 }
 0x5ee   :  { %v84_v55 = vmul.f32 %v950_v53, %v1078_v20 }
 0x5f0   :  { %v92_v56 = vmul.f32 %v723_v54, %v84_v55 }
 0x5f2   :  { %v94_v57 = vand.u32 2147483647, %v92_v56 }
 0x5f4   :  { %v98_v58 = vsel %vm44_vm0, %v94_v57, -inf }
 0x5f5   :  { %99 = vmax.xlane.f32.xlu1 %v98_v58 }
 0x5f7   :  { %v952_v59 = vpop.eup %951 }
 0x5f8   :  { %v83_v60 = vmul.f32 %v952_v59, %v1071_v15  ;;  %v954_v20 = vpop.eup %953 }
 0x5f9   :  { %v956_v2 = vpop.eup %955  ;;  %v504_v3 = vmul.f32 127.0, %v954_v20 }
 0x5fa   :  { %v91_v61 = vmul.f32 %v723_v54, %v83_v60  ;;  %v506_v4 = vmul.f32 127.0, %v956_v2 }
 0x5fb   :  { %v507_v5 = vmul.f32 %v504_v3, %v1160_v9 }
 0x5fc   :  { %v93_v63 = vand.u32 2147483647, %v91_v61  ;;  %v508_v7 = vmul.f32 %v506_v4, %v1165_v16  ;;  %v574_v16 = vpop.permute.xlu1 %573 }
 0x5fd   :  { %v843_v15 = vcvt.f32.s32 %v507_v5  ;;  %v846_v50 = vand.u32 2147483648, %v507_v5  ;;  %v841_v13 = vand.u32 2147483647, %v507_v5 }
 0x5fe   :  { %v95_v0 = vsel %vm44_vm0, %v93_v63, -inf  ;;  %v851_v10 = vcvt.f32.s32 %v508_v7  ;;  %v854_v12 = vand.u32 2147483648, %v508_v7  ;;  %v849_v14 = vand.u32 2147483647, %v508_v7 }
 0x5ff   :  { %96 = vmax.xlane.f32.xlu0 %v95_v0  ;;  %v844_v46 = vcvt.s32.f32 %v843_v15  ;;  %vm842_vm8 = vcmp.lt.f32.partialorder %v841_v13, 8388608.0 }
 0x600   :  { %v852_v47 = vcvt.s32.f32 %v851_v10  ;;  %vm850_vm9 = vcmp.lt.f32.partialorder %v849_v14, 8388608.0 }
 0x601   :  { %v845_v11 = vand.u32 2147483647, %v844_v46 }
 0x602   :  { %v853_v48 = vand.u32 2147483647, %v852_v47 }
 0x603   :  { %v847_v18 = vor.u32 %v846_v50, %v845_v11 }
 0x604   :  { %v855_v19 = vor.u32 %v854_v12, %v853_v48 }
 0x605   :  { %v848_v23 = vsel %vm842_vm8, %v847_v18, %v507_v5 }
 0x606   :  { %v856_v24 = vsel %vm850_vm9, %v855_v19, %v508_v7  ;;  %v511_v9 = vmax.f32 %v848_v23, -128.0 }
 0x607   :  { %v512_v25 = vmax.f32 %v856_v24, -128.0 }
 0x608   :  { %v513_v26 = vmin.f32 %v511_v9, 127.0 }
 0x609   :  { %v514_v27 = vmin.f32 %v512_v25, 127.0 }
 0x60a   :  { %v576_v29 = vmul.f32 %v569_v21, %v513_v26 }
 0x60b   :  { %v577_v62 = vmul.f32 %v574_v16, %v514_v27 }
 0x62a   :  { %v886_v28 = vpop.permute.xlu1 %885 }
 0x62b   :  { %v888_v30 = vunpack.i.h.bf16 %v886_v28  ;;  %v887_v8 = vunpack.i.l.bf16 %v886_v28 }
 0x62d   :  { %v600_v31 = vsel %vm471_vm5, %v576_v29, %v887_v8  ;;  %v601_v32 = vsel %vm471_vm5, %v577_v62, %v888_v30 }
 0x62e   :  { %806 = vmatprep.mubr.f32.mxu0 %v600_v31 }
 0x62f   :  { %807 = vmatmul.mubr.f32.vlgmr.msra.gmra.mxu0 %v601_v32 }
 0x67e   :  { %v100_v33 = vpop.xlane.xlu1 %99 }
 0x67f   :  { %v102_v34 = vmax.f32 %v100_v33, 1e-05 }
 0x681   :  { %957 = vrcp.f32 %v102_v34  ;;  %v117_v10 = vmul.f32 0.007874016, %v102_v34 }
 0x688   :  { %v97_v35 = vpop.xlane.xlu0 %96 }
 0x689   :  { %v101_v36 = vmax.f32 %v97_v35, 1e-05 }
 0x68b   :  { %959 = vrcp.f32 %v101_v36  ;;  %v116_v5 = vmul.f32 0.007874016, %v101_v36 }
 0x68e   :  { %v958_v37 = vpop.eup %957 }
 0x68f   :  { %v106_v38 = vmul.f32 127.0, %v958_v37 }
 0x691   :  { %v108_v39 = vmul.f32 %v106_v38, %v92_v56 }
 0x693   :  { %v819_v1 = vcvt.f32.s32 %v108_v39  ;;  %v822_v44 = vand.u32 2147483648, %v108_v39  ;;  %v817_v45 = vand.u32 2147483647, %v108_v39 }
 0x695   :  { %v820_v40 = vcvt.s32.f32 %v819_v1  ;;  %vm818_vm10 = vcmp.lt.f32.partialorder %v817_v45, 8388608.0 }
 0x697   :  { %v821_v42 = vand.u32 2147483647, %v820_v40 }
 0x698   :  { %v960_v41 = vpop.eup %959 }
 0x699   :  { %v104_v6 = vmul.f32 127.0, %v960_v41  ;;  %v823_v51 = vor.u32 %v822_v44, %v821_v42 }
 0x69b   :  { %v107_v43 = vmul.f32 %v104_v6, %v91_v61  ;;  %v824_v57 = vsel %vm818_vm10, %v823_v51, %v108_v39  ;;  %v724_v61 = vld [vmem:[%s1269_s3] ss:$0 sm:$0xff]  ;;  %s997_s3 = smov [#allocation2]  }
 0x69c   :  { %v112_v59 = vmax.f32 %v824_v57, -128.0  ;;  %s707_s5 = sshll.u32 %s997_s3, 4  ;;  %s708_s5 = int_to_ptr.vmem [resolvable:$true] %s707_s5 }
 0x69d   :  { %v811_v49 = vcvt.f32.s32 %v107_v43  ;;  %v809_v53 = vand.u32 2147483647, %v107_v43  ;;  %v814_v55 = vand.u32 2147483648, %v107_v43  ;;  %s969_s28 = scalar_lea.vmem %s708_s5, 256  ;;  %p974_p1 = scmp.lt.s32.totalorder %s708_s5, %s708_s5 }
 0x69e   :  { %v114_v0 = vmin.f32 %v112_v59, 127.0  ;;  %p970_p0 = scmp.ne.s32.totalorder %s708_s5, %s969_s28  ;;  %p975_p2 = scmp.lt.s32.totalorder %s969_s28, %s969_s28 }
 0x69f   :  { %v812_v52 = vcvt.s32.f32 %v811_v49  ;;  %vm810_vm11 = vcmp.lt.f32.partialorder %v809_v53, 8388608.0 }
 0x6a0   :  { %v126_v3 = vmul.f32 %v724_v61, %v114_v0  ;;  %p976_p3 = por %p975_p2, %p974_p1 }
 0x6a1   :  { %v813_v54 = vand.u32 2147483647, %v812_v52 }
 0x6a2   :  { %v130_v4 = vsel %vm44_vm0, %v126_v3, 0.0  ;;  %p977_p4 = pnand %p976_p3, %p970_p0 }
 0x6a3   :  { %v815_v58 = vor.u32 %v814_v55, %v813_v54 }
 0x6a5   :  { %v816_v56 = vsel %vm810_vm11, %v815_v58, %v107_v43 }
 0x6a6   :  { %v111_v60 = vmax.f32 %v816_v56, -128.0 }
 0x6a8   :  { %v113_v63 = vmin.f32 %v111_v60, 127.0 }
 0x6aa   :  { %v125_v20 = vmul.f32 %v724_v61, %v113_v63 }
 0x6ac   :  { %v127_v2 = vsel %vm44_vm0, %v125_v20, 0.0 }
 0x6ad   :  { %128 = vadd.xlane.f32.xlu0 %v127_v2 }
 0x6b1   :  { %131 = vadd.xlane.f32.xlu0 %v130_v4 }
 0x6ef   :  { %v808_v18 = vpop.f32.mrf.mxu0 }
 0x6f1   :  { %v684_v21 = vpop.f32.mrf.mxu0 }
 0x736   :  { %v129_v7 = vpop.xlane.xlu0 %128 }
 0x737   :  { %v133_v15 = vmul.f32 %v129_v7, %v116_v5 }
 0x739   :  { %v725_v46 = vmul.f32 -1.442695, %v133_v15 }
 0x73a   :  { %v132_v47 = vpop.xlane.xlu0 %131 }
 0x73b   :  { %961 = vpow2.f32 %v725_v46  ;;  %v134_v11 = vmul.f32 %v132_v47, %v117_v10 }
 0x73d   :  { %v726_v48 = vmul.f32 -1.442695, %v134_v11 }
 0x73f   :  { %963 = vpow2.f32 %v726_v48 }
 0x748   :  { %v962_v50 = vpop.eup %961 }
 0x749   :  { %v141_v12 = vadd.f32 1.0, %v962_v50 }
 0x74b   :  { %965 = vrcp.f32 %v141_v12 }
 0x74c   :  { %v964_v13 = vpop.eup %963 }
 0x74d   :  { %v142_v14 = vadd.f32 1.0, %v964_v13 }
 0x74f   :  { %967 = vrcp.f32 %v142_v14 }
 0x758   :  { %v966_v19 = vpop.eup %965 }
 0x759   :  { %v693_v23 = vmul.f32 %v966_v19, %v684_v21 }
 0x75b   :  { %v695_v24 = vadd.f32 %v693_v23, %v1074_v17 }
 0x75c   :  { %v968_v9 = vpop.eup %967 }
 0x75d   :  { %v694_v25 = vmul.f32 %v968_v9, %v808_v18  ;;  %697 = vst.msk [vmem:[#allocation2] sm:$0xff] %vm44_vm0, %v695_v24 }
 0x75f   :  { %v696_v16 = vadd.f32 %v694_v25, %v1082_v22 }
 0x761   :  { %698 = vst.msk [vmem:[#allocation2 + $0x8] sm:$0xff] %vm44_vm0, %v696_v16 }
 0x762   :  { %980 = shalt.err (!%p977_p4)
}
 0x763   :  { %s998_s29 = smov 128   ;;  %s999_s30 = smov 8  }
 0x764   :  { %713 = dma.vmem_to_hbm [thread:$0]  %s708_s5, 256, %s1276_s10, [#allocation3], %s998_s29, %s998_s29, %s999_s30  }
 0x765   :  { %989 = dma.done.wait [#allocation3], 256  }
 0x766   :  { %990 = vsyncadd [#allocation3], 4294967040 }
 0x767   :  { %721 = vsyncpa [#allocation3], 1 }

</bundles_post_ra>
